<compile_context>
chip_gen: v5e
topology: v5e:2x2
jax: 0.10.0
libtpu: 0.0.40
codegen_flags: <defaults>
</compile_context>

<pallas_src>
import functools

import jax
import jax.numpy as jnp
from jax import lax
from jax.experimental import pallas as pl
from jax.experimental.pallas import tpu as pltpu


# ------------------------------ small helpers ------------------------------ #

def _cdiv(a, b):
    return -(-a // b)


def _round_up(a, b):
    return _cdiv(a, b) * b


def _vmem_cap_bytes():
    """Chip-aware scoped-VMEM ceiling (~0.85 * physical; safe 54 MiB fallback)."""
    cap = 64 * 1024 * 1024
    try:
        info = pltpu.get_tpu_info()
        cap = int(getattr(info, "vmem_capacity_bytes", cap))
    except Exception:
        pass
    return int(cap * 0.85)


# ----------------------------- Pallas kernels ------------------------------ #

def _conv_kernel(x_ref, w_ref, b_ref, o_ref, *, scale):
    """One (image, row-slab, C_out-tile) step of the fused 3x3 stride-s conv.

    x_ref: (1, s, s, 1, th + halo, n_w, C_in_p)  bf16 parity-split slab (+ halo rows)
           x_ref[0, a, b, 0, r, q, c] == x_pad[(slab*th + r)*s + a, q*s + b, c]
    w_ref: (9, C_in_p, tn)  bf16 per-tap weights (kh*3 + kw major)
    b_ref: (1, tn)          f32 bias (zero-padded)
    o_ref: (1, 1, th, n_w, tn)   columns >= W_out are garbage and cropped on the host
    """
    th = o_ref.shape[2]
    n_w = o_ref.shape[3]
    tn = o_ref.shape[4]
    c_in = x_ref.shape[-1]
    m = th * n_w

    # dj-grouped f32 accumulators; group 0 starts from the broadcast bias so no
    # separate bias pass is needed.
    accs = {0: jnp.broadcast_to(b_ref[...].astype(jnp.float32), (m, tn))}
    for kh in range(3):
        di, a = divmod(kh, scale)            # padded row = s*(i + di) + a
        for kw in range(3):
            dj, b = divmod(kw, scale)        # padded col = s*(j + dj) + b
            # Leading-dim slice + layout-preserving reshape (n_w % 8 == 0): no
            # per-tap relayout copy is materialized.
            tap = x_ref[0, a, b, 0, di:di + th, :, :].reshape(m, c_in)
            part = jnp.dot(tap, w_ref[kh * 3 + kw],
                           preferred_element_type=jnp.float32)
            accs[dj] = part if dj not in accs else accs[dj] + part

    acc = accs.pop(0)
    for dj, part in accs.items():
        # Realign columns once per dj-group: rolled[r] = part[r + dj]; wrapped rows
        # only land in the cropped (j >= W_out) columns.
        acc = acc + jnp.roll(part, shift=-dj, axis=0)

    o_ref[0, 0] = acc.reshape(th, n_w, tn).astype(o_ref.dtype)


def _avgpool_kernel(x_ref, o_ref, *, scale):
    """Row-pooling over column-pre-summed NCHW rows.

    x_ref: (1, C_t, th, s, W_out)   x_ref[0, c, i, a, j] == sum_b x[c, i*s + a, j*s + b]
    o_ref: (1, C_t, th, W_out)
    """
    v = x_ref[0].astype(jnp.float32)                      # (C_t, th, s, W_out)
    o_ref[0] = (jnp.sum(v, axis=2) * (1.0 / float(scale * scale))).astype(o_ref.dtype)


# ------------------------------ host wrappers ------------------------------ #

@functools.partial(jax.jit, static_argnames=("scale",))
def downsample_conv2d(x_nchw, weight_oihw, bias, scale=2):
    """3x3 conv, stride=scale, padding=1.  x: (N, C_in, H, W) -> (N, C_out, H', W')."""
    N, C_in, H, W = x_nchw.shape
    C_out = weight_oihw.shape[0]
    s = int(scale)
    H_out = (H - 1) // s + 1
    W_out = (W - 1) // s + 1
    halo = 2 // s                                   # extra super-rows/cols a 3x3 reaches
    n_dj = len({kw // s for kw in range(3)})        # number of distinct column offsets

    # ---- tiling choices ---------------------------------------------------- #
    C_in_p = _round_up(C_in, 8)
    lane_cin = _round_up(max(C_in_p, 128), 128)     # VMEM lane padding of the minor dim
    C_out_pad = _round_up(C_out, 128)
    tn = 256 if C_out_pad % 256 == 0 else 128
    n_w8 = _round_up(W_out + halo, 8)               # super-column count, 8-padded
    out_isz = x_nchw.dtype.itemsize

    cap = _vmem_cap_bytes()
    w_blk = 9 * C_in_p * tn * 2
    fixed = 2 * w_blk + 2 * (s * s * halo * n_w8 * lane_cin * 2) + (2 << 20)
    per_row = (2 * s * s * n_w8 * lane_cin * 2      # x slab rows (bf16, double-buffered)
               + 2 * n_w8 * tn * out_isz            # output rows (double-buffered)
               + n_dj * n_w8 * tn * 4               # f32 accumulators
               + 2 * n_w8 * lane_cin * 2)           # tap temporaries (paranoia)
    budget = min(cap, 32 << 20)
    th = max(1, min(H_out, (budget - fixed) // per_row))

    # megacore: guarantee >= 2 independent blocks when possible
    if N * _cdiv(H_out, th) * (C_out_pad // tn) < 2:
        if H_out >= 2:
            th = _cdiv(H_out, 2)
        elif C_out_pad >= 256:
            tn = 128

    num_slabs = _cdiv(H_out, th)
    H_out_pad = num_slabs * th
    n_sup_h = H_out_pad + halo

    # ---- host layout: parity split (bf16) + overlapping slab windows -------- #
    Hq, Wq = s * n_sup_h, s * n_w8
    h_keep = min(H, Hq - 1)
    w_keep = min(W, Wq - 1)
    xp = jnp.pad(
        x_nchw[:, :, :h_keep, :w_keep].astype(jnp.bfloat16),
        ((0, 0), (0, C_in_p - C_in), (1, Hq - 1 - h_keep), (1, Wq - 1 - w_keep)))
    x6 = xp.reshape(N, C_in_p, n_sup_h, s, n_w8, s)
    x6 = jnp.transpose(x6, (0, 3, 5, 2, 4, 1))      # (N, s, s, n_sup_h, n_w8, C_in_p)
    if num_slabs == 1:
        x7 = x6[:, :, :, None]
    elif halo == 0:
        x7 = x6.reshape(N, s, s, num_slabs, th, n_w8, C_in_p)
    else:
        idx = jnp.arange(num_slabs)[:, None] * th + jnp.arange(th + halo)[None, :]
        x7 = jnp.take(x6, idx, axis=3)              # (N, s, s, slabs, th+halo, n_w8, C)

    w9 = jnp.transpose(weight_oihw, (2, 3, 1, 0)).reshape(9, C_in, C_out)
    w9 = jnp.pad(w9, ((0, 0), (0, C_in_p - C_in), (0, C_out_pad - C_out)))
    w9 = w9.astype(jnp.bfloat16)
    b2 = jnp.pad(bias.reshape(1, C_out).astype(jnp.float32),
                 ((0, 0), (0, C_out_pad - C_out)))

    # ---- grid order: keep the larger operand resident ----------------------- #
    n_j = C_out_pad // tn
    x_bytes = N * num_slabs * s * s * (th + halo) * n_w8 * C_in_p * 2
    w_bytes = 9 * C_in_p * C_out_pad * 2
    w_resident = x_bytes * (n_j - 1) < w_bytes * (N * num_slabs - 1)
    if w_resident:
        grid = (n_j, N, num_slabs)
        x_map = lambda j, n, sl: (n, 0, 0, sl, 0, 0, 0)
        w_map = lambda j, n, sl: (0, 0, j)
        b_map = lambda j, n, sl: (0, j)
        o_map = lambda j, n, sl: (n, sl, 0, 0, j)
    else:
        grid = (N, num_slabs, n_j)
        x_map = lambda n, sl, j: (n, 0, 0, sl, 0, 0, 0)
        w_map = lambda n, sl, j: (0, 0, j)
        b_map = lambda n, sl, j: (0, j)
        o_map = lambda n, sl, j: (n, sl, 0, 0, j)

    x_blk = s * s * (th + halo) * n_w8 * lane_cin * 2
    o_blk = th * n_w8 * tn * out_isz
    acc_blk = n_dj * th * n_w8 * tn * 4 + 2 * th * n_w8 * lane_cin * 2
    need = 2 * x_blk + 2 * w_blk + 2 * o_blk + acc_blk + (2 << 20)
    cp = dict(dimension_semantics=("parallel", "parallel", "parallel"))
    if need > (16 << 20):
        # TODO(synk): if even th=1 overflows `cap` (enormous W * C), add column tiling.
        cp["vmem_limit_bytes"] = int(min(cap, max(need, 32 << 20)))

    out = pl.pallas_call(
        functools.partial(_conv_kernel, scale=s),
        out_shape=jax.ShapeDtypeStruct((N, num_slabs, th, n_w8, C_out_pad),
                                       x_nchw.dtype),
        grid=grid,
        in_specs=[
            pl.BlockSpec((1, s, s, 1, th + halo, n_w8, C_in_p), x_map),
            pl.BlockSpec((9, C_in_p, tn), w_map),
            pl.BlockSpec((1, tn), b_map),
        ],
        out_specs=pl.BlockSpec((1, 1, th, n_w8, tn), o_map),
        compiler_params=pltpu.CompilerParams(**cp),
    )(x7, w9, b2)

    out = out.reshape(N, H_out_pad, n_w8, C_out_pad)[:, :H_out, :W_out, :C_out]
    return jnp.transpose(out, (0, 3, 1, 2))         # back to NCHW to match torch


@functools.partial(jax.jit, static_argnames=("scale",))
def downsample_avgpool2d(x_nchw, scale=2):
    """AvgPool2d(kernel_size=scale, stride=scale).  x: (N, C, H, W), NCHW in and out."""
    N, C, H, W = x_nchw.shape
    s = int(scale)
    H_out, W_out = H // s, W // s
    isz = x_nchw.dtype.itemsize

    # Host-side column pre-sum (contiguous minor-dim reduce, fused by XLA — no
    # layout transpose).  The Pallas kernel then reduces the pooling rows.
    xc = x_nchw[:, :, :H_out * s, :W_out * s]
    xcol = xc.reshape(N, C, H_out * s, W_out, s).sum(axis=-1, dtype=jnp.float32)
    xcol = xcol.astype(x_nchw.dtype)

    # ---- tiling: block (1, C_t, th, s, W_out); cdiv grid over padded rows ---- #
    cap = _vmem_cap_bytes()
    budget = min(cap, 24 << 20)
    wlane = _round_up(max(W_out, 128), 128)
    C_t, th = 1, H_out
    for d in range(C, 0, -1):
        if C % d:
            continue
        per_row = 2 * d * 8 * wlane * isz + 2 * d * wlane * isz + d * 8 * wlane * 4
        rows = budget // per_row
        if rows >= H_out:
            C_t, th = d, H_out
            break
        if rows >= 8:
            C_t, th = d, min(H_out, (rows // 8) * 8)
            break
    # megacore: if a single block would cover everything, split the rows
    if N == 1 and C_t == C and th >= H_out and H_out >= 16:
        th = max(8, (H_out // 2 // 8) * 8)

    H_out_pad = _cdiv(H_out, th) * th
    if H_out_pad != H_out:
        xcol = jnp.pad(xcol, ((0, 0), (0, 0), (0, (H_out_pad - H_out) * s), (0, 0)))
    x5 = xcol.reshape(N, C, H_out_pad, s, W_out)

    n_cb = C // C_t
    n_hb = H_out_pad // th
    in_blk = C_t * th * 8 * wlane * isz
    out_blk = C_t * _round_up(th, 8) * wlane * isz
    need = 2 * in_blk + 2 * out_blk + C_t * th * 8 * wlane * 4 + (2 << 20)
    cp = dict(dimension_semantics=("parallel", "parallel", "parallel"))
    if need > (16 << 20):
        cp["vmem_limit_bytes"] = int(min(cap, max(need, 32 << 20)))

    out = pl.pallas_call(
        functools.partial(_avgpool_kernel, scale=s),
        out_shape=jax.ShapeDtypeStruct((N, C, H_out_pad, W_out), x_nchw.dtype),
        grid=(N, n_cb, n_hb),
        in_specs=[pl.BlockSpec((1, C_t, th, s, W_out),
                               lambda n, c, h: (n, c, h, 0, 0))],
        out_specs=pl.BlockSpec((1, C_t, th, W_out), lambda n, c, h: (n, c, h, 0)),
        compiler_params=pltpu.CompilerParams(**cp),
    )(x5)

    return out[:, :, :H_out, :]                      # already NCHW


class Downsample:
    """JAX/Pallas port of the PyTorch Downsample module (dims=2, int scale)."""

    def __init__(self, channels, use_conv, dims=2, out_channels=None, scale=2, key=None):
        assert dims == 2               # TODO(synk): dims=1/3 variants not implemented
        assert isinstance(scale, int)  # TODO(synk): tuple strides not implemented
        self.channels = channels
        self.out_channels = out_channels or channels
        self.use_conv = use_conv
        self.scale = scale
        if use_conv:
            key = key if key is not None else jax.random.PRNGKey(0)
            kw_, kb_ = jax.random.split(key)
            fan_in = channels * 3 * 3
            bound = 1.0 / jnp.sqrt(fan_in)
            self.weight = jax.random.uniform(
                kw_, (self.out_channels, channels, 3, 3),
                minval=-bound, maxval=bound, dtype=jnp.float32)
            self.bias = jax.random.uniform(
                kb_, (self.out_channels,), minval=-bound, maxval=bound,
                dtype=jnp.float32)
        else:
            assert self.channels == self.out_channels

    def __call__(self, x):
        assert x.shape[1] == self.channels
        if self.use_conv:
            return downsample_conv2d(x, self.weight, self.bias, scale=self.scale)
        return downsample_avgpool2d(x, scale=self.scale)


# ------------------------------- references -------------------------------- #

def _ref_conv(x, w, b, scale):
    y = lax.conv_general_dilated(
        x, w, window_strides=(scale, scale), padding=((1, 1), (1, 1)),
        dimension_numbers=("NCHW", "OIHW", "NCHW"),
        precision=lax.Precision.HIGHEST)
    return y + b.reshape(1, -1, 1, 1)


def _ref_avgpool(x, scale):
    N, C, H, W = x.shape
    return x.reshape(N, C, H // scale, scale, W // scale, scale).mean(axis=(3, 5))


# ---------------------------------- main ----------------------------------- #

if __name__ == "__main__":
    key = jax.random.PRNGKey(0)
    kx, kp = jax.random.split(key)
    x = jax.random.normal(kx, (2, 4, 16, 16), dtype=jnp.float32)

    # conv path (use_conv=True, out_channels=8)
    ds_conv = Downsample(channels=4, use_conv=True, dims=2, out_channels=8, scale=2,
                         key=kp)
    y_conv = jax.block_until_ready(ds_conv(x))
    y_conv_ref = _ref_conv(x, ds_conv.weight, ds_conv.bias, 2)
    assert y_conv.shape == (2, 8, 8, 8), y_conv.shape
    # bf16 MXU operands with f32 accumulation vs. an f32-HIGHEST reference.
    assert jnp.allclose(y_conv, y_conv_ref, atol=2e-2, rtol=2e-2), \
        float(jnp.max(jnp.abs(y_conv - y_conv_ref)))

    # avg-pool path (use_conv=False)
    ds_pool = Downsample(channels=4, use_conv=False, dims=2, scale=2)
    y_pool = jax.block_until_ready(ds_pool(x))
    y_pool_ref = _ref_avgpool(x, 2)
    assert y_pool.shape == (2, 4, 8, 8), y_pool.shape
    assert jnp.allclose(y_pool, y_pool_ref, atol=1e-5, rtol=1e-5)

    print("KERNEL_OK")
</pallas_src>

<mosaic_0001>
module attributes {stable_mosaic.version = 11 : i64} {
  func.func @_conv_kernel(%arg0: i32, %arg1: i32, %arg2: i32, %arg3: memref<1x2x2x1x9x16x8xbf16, #tpu.memory_space<vmem>>, %arg4: memref<9x8x128xbf16, #tpu.memory_space<vmem>>, %arg5: memref<1x128xf32, #tpu.memory_space<vmem>>, %arg6: memref<1x1x8x16x128xf32, #tpu.memory_space<vmem>>) attributes {dimension_semantics = [#tpu.dimension_semantics<parallel>, #tpu.dimension_semantics<parallel>, #tpu.dimension_semantics<parallel>], iteration_bounds = array<i64: 1, 2, 1>, scalar_prefetch = 0 : i64, scratch_operands = 0 : i64, tpu.core_type = #tpu.core_type<tc>, window_params = [{transform_indices = @transform_0, window_bounds = array<i64: 1, 2, 2, 1, 9, 16, 8>}, {transform_indices = @transform_1, window_bounds = array<i64: 9, 8, 128>}, {transform_indices = @transform_2, window_bounds = array<i64: 1, 128>}, {transform_indices = @transform_3, window_bounds = array<i64: 1, 1, 8, 16, 128>}]} {
    %c0 = arith.constant 0 : index
    %c0_0 = arith.constant 0 : index
    %0 = vector.load %arg5[%c0, %c0_0] : memref<1x128xf32, #tpu.memory_space<vmem>>, vector<1x128xf32>
    %1 = vector.shape_cast %0 : vector<1x128xf32> to vector<1x128xf32>
    %2 = vector.broadcast %1 : vector<1x128xf32> to vector<128x128xf32>
    %c0_1 = arith.constant 0 : index
    %c0_2 = arith.constant 0 : index
    %c0_3 = arith.constant 0 : index
    %c0_4 = arith.constant 0 : index
    %c0_5 = arith.constant 0 : index
    %c0_6 = arith.constant 0 : index
    %c0_7 = arith.constant 0 : index
    %3 = vector.load %arg3[%c0_1, %c0_2, %c0_3, %c0_4, %c0_5, %c0_6, %c0_7] : memref<1x2x2x1x9x16x8xbf16, #tpu.memory_space<vmem>>, vector<1x1x1x1x8x16x8xbf16>
    %4 = vector.shape_cast %3 : vector<1x1x1x1x8x16x8xbf16> to vector<8x16x8xbf16>
    %5 = vector.shape_cast %4 : vector<8x16x8xbf16> to vector<128x8xbf16>
    %c0_8 = arith.constant 0 : index
    %c0_9 = arith.constant 0 : index
    %c0_10 = arith.constant 0 : index
    %6 = vector.load %arg4[%c0_8, %c0_9, %c0_10] : memref<9x8x128xbf16, #tpu.memory_space<vmem>>, vector<1x8x128xbf16>
    %7 = vector.shape_cast %6 : vector<1x8x128xbf16> to vector<8x128xbf16>
    %cst = arith.constant dense<0.000000e+00> : vector<128x128xf32>
    %8 = tpu.matmul %5, %7, %cst {dimension_numbers = #tpu.dot_dimension_numbers<[1], [0], [0], [1], [0, 0, 1, 1], [], []>} : vector<128x8xbf16>, vector<8x128xbf16>, vector<128x128xf32> -> vector<128x128xf32>
    %9 = arith.addf %2, %8 : vector<128x128xf32>
    %c0_11 = arith.constant 0 : index
    %c0_12 = arith.constant 0 : index
    %c1 = arith.constant 1 : index
    %c0_13 = arith.constant 0 : index
    %c0_14 = arith.constant 0 : index
    %c0_15 = arith.constant 0 : index
    %c0_16 = arith.constant 0 : index
    %10 = vector.load %arg3[%c0_11, %c0_12, %c1, %c0_13, %c0_14, %c0_15, %c0_16] : memref<1x2x2x1x9x16x8xbf16, #tpu.memory_space<vmem>>, vector<1x1x1x1x8x16x8xbf16>
    %11 = vector.shape_cast %10 : vector<1x1x1x1x8x16x8xbf16> to vector<8x16x8xbf16>
    %12 = vector.shape_cast %11 : vector<8x16x8xbf16> to vector<128x8xbf16>
    %c1_17 = arith.constant 1 : index
    %c0_18 = arith.constant 0 : index
    %c0_19 = arith.constant 0 : index
    %13 = vector.load %arg4[%c1_17, %c0_18, %c0_19] : memref<9x8x128xbf16, #tpu.memory_space<vmem>>, vector<1x8x128xbf16>
    %14 = vector.shape_cast %13 : vector<1x8x128xbf16> to vector<8x128xbf16>
    %cst_20 = arith.constant dense<0.000000e+00> : vector<128x128xf32>
    %15 = tpu.matmul %12, %14, %cst_20 {dimension_numbers = #tpu.dot_dimension_numbers<[1], [0], [0], [1], [0, 0, 1, 1], [], []>} : vector<128x8xbf16>, vector<8x128xbf16>, vector<128x128xf32> -> vector<128x128xf32>
    %16 = arith.addf %9, %15 : vector<128x128xf32>
    %c0_21 = arith.constant 0 : index
    %c0_22 = arith.constant 0 : index
    %c0_23 = arith.constant 0 : index
    %c0_24 = arith.constant 0 : index
    %c0_25 = arith.constant 0 : index
    %c0_26 = arith.constant 0 : index
    %c0_27 = arith.constant 0 : index
    %17 = vector.load %arg3[%c0_21, %c0_22, %c0_23, %c0_24, %c0_25, %c0_26, %c0_27] : memref<1x2x2x1x9x16x8xbf16, #tpu.memory_space<vmem>>, vector<1x1x1x1x8x16x8xbf16>
    %18 = vector.shape_cast %17 : vector<1x1x1x1x8x16x8xbf16> to vector<8x16x8xbf16>
    %19 = vector.shape_cast %18 : vector<8x16x8xbf16> to vector<128x8xbf16>
    %c2 = arith.constant 2 : index
    %c0_28 = arith.constant 0 : index
    %c0_29 = arith.constant 0 : index
    %20 = vector.load %arg4[%c2, %c0_28, %c0_29] : memref<9x8x128xbf16, #tpu.memory_space<vmem>>, vector<1x8x128xbf16>
    %21 = vector.shape_cast %20 : vector<1x8x128xbf16> to vector<8x128xbf16>
    %cst_30 = arith.constant dense<0.000000e+00> : vector<128x128xf32>
    %22 = tpu.matmul %19, %21, %cst_30 {dimension_numbers = #tpu.dot_dimension_numbers<[1], [0], [0], [1], [0, 0, 1, 1], [], []>} : vector<128x8xbf16>, vector<8x128xbf16>, vector<128x128xf32> -> vector<128x128xf32>
    %c0_31 = arith.constant 0 : index
    %c1_32 = arith.constant 1 : index
    %c0_33 = arith.constant 0 : index
    %c0_34 = arith.constant 0 : index
    %c0_35 = arith.constant 0 : index
    %c0_36 = arith.constant 0 : index
    %c0_37 = arith.constant 0 : index
    %23 = vector.load %arg3[%c0_31, %c1_32, %c0_33, %c0_34, %c0_35, %c0_36, %c0_37] : memref<1x2x2x1x9x16x8xbf16, #tpu.memory_space<vmem>>, vector<1x1x1x1x8x16x8xbf16>
    %24 = vector.shape_cast %23 : vector<1x1x1x1x8x16x8xbf16> to vector<8x16x8xbf16>
    %25 = vector.shape_cast %24 : vector<8x16x8xbf16> to vector<128x8xbf16>
    %c3 = arith.constant 3 : index
    %c0_38 = arith.constant 0 : index
    %c0_39 = arith.constant 0 : index
    %26 = vector.load %arg4[%c3, %c0_38, %c0_39] : memref<9x8x128xbf16, #tpu.memory_space<vmem>>, vector<1x8x128xbf16>
    %27 = vector.shape_cast %26 : vector<1x8x128xbf16> to vector<8x128xbf16>
    %cst_40 = arith.constant dense<0.000000e+00> : vector<128x128xf32>
    %28 = tpu.matmul %25, %27, %cst_40 {dimension_numbers = #tpu.dot_dimension_numbers<[1], [0], [0], [1], [0, 0, 1, 1], [], []>} : vector<128x8xbf16>, vector<8x128xbf16>, vector<128x128xf32> -> vector<128x128xf32>
    %29 = arith.addf %16, %28 : vector<128x128xf32>
    %c0_41 = arith.constant 0 : index
    %c1_42 = arith.constant 1 : index
    %c1_43 = arith.constant 1 : index
    %c0_44 = arith.constant 0 : index
    %c0_45 = arith.constant 0 : index
    %c0_46 = arith.constant 0 : index
    %c0_47 = arith.constant 0 : index
    %30 = vector.load %arg3[%c0_41, %c1_42, %c1_43, %c0_44, %c0_45, %c0_46, %c0_47] : memref<1x2x2x1x9x16x8xbf16, #tpu.memory_space<vmem>>, vector<1x1x1x1x8x16x8xbf16>
    %31 = vector.shape_cast %30 : vector<1x1x1x1x8x16x8xbf16> to vector<8x16x8xbf16>
    %32 = vector.shape_cast %31 : vector<8x16x8xbf16> to vector<128x8xbf16>
    %c4 = arith.constant 4 : index
    %c0_48 = arith.constant 0 : index
    %c0_49 = arith.constant 0 : index
    %33 = vector.load %arg4[%c4, %c0_48, %c0_49] : memref<9x8x128xbf16, #tpu.memory_space<vmem>>, vector<1x8x128xbf16>
    %34 = vector.shape_cast %33 : vector<1x8x128xbf16> to vector<8x128xbf16>
    %cst_50 = arith.constant dense<0.000000e+00> : vector<128x128xf32>
    %35 = tpu.matmul %32, %34, %cst_50 {dimension_numbers = #tpu.dot_dimension_numbers<[1], [0], [0], [1], [0, 0, 1, 1], [], []>} : vector<128x8xbf16>, vector<8x128xbf16>, vector<128x128xf32> -> vector<128x128xf32>
    %36 = arith.addf %29, %35 : vector<128x128xf32>
    %c0_51 = arith.constant 0 : index
    %c1_52 = arith.constant 1 : index
    %c0_53 = arith.constant 0 : index
    %c0_54 = arith.constant 0 : index
    %c0_55 = arith.constant 0 : index
    %c0_56 = arith.constant 0 : index
    %c0_57 = arith.constant 0 : index
    %37 = vector.load %arg3[%c0_51, %c1_52, %c0_53, %c0_54, %c0_55, %c0_56, %c0_57] : memref<1x2x2x1x9x16x8xbf16, #tpu.memory_space<vmem>>, vector<1x1x1x1x8x16x8xbf16>
    %38 = vector.shape_cast %37 : vector<1x1x1x1x8x16x8xbf16> to vector<8x16x8xbf16>
    %39 = vector.shape_cast %38 : vector<8x16x8xbf16> to vector<128x8xbf16>
    %c5 = arith.constant 5 : index
    %c0_58 = arith.constant 0 : index
    %c0_59 = arith.constant 0 : index
    %40 = vector.load %arg4[%c5, %c0_58, %c0_59] : memref<9x8x128xbf16, #tpu.memory_space<vmem>>, vector<1x8x128xbf16>
    %41 = vector.shape_cast %40 : vector<1x8x128xbf16> to vector<8x128xbf16>
    %cst_60 = arith.constant dense<0.000000e+00> : vector<128x128xf32>
    %42 = tpu.matmul %39, %41, %cst_60 {dimension_numbers = #tpu.dot_dimension_numbers<[1], [0], [0], [1], [0, 0, 1, 1], [], []>} : vector<128x8xbf16>, vector<8x128xbf16>, vector<128x128xf32> -> vector<128x128xf32>
    %43 = arith.addf %22, %42 : vector<128x128xf32>
    %c0_61 = arith.constant 0 : index
    %c0_62 = arith.constant 0 : index
    %c0_63 = arith.constant 0 : index
    %c0_64 = arith.constant 0 : index
    %c1_65 = arith.constant 1 : index
    %c0_66 = arith.constant 0 : index
    %c0_67 = arith.constant 0 : index
    %44 = vector.load %arg3[%c0_61, %c0_62, %c0_63, %c0_64, %c1_65, %c0_66, %c0_67] : memref<1x2x2x1x9x16x8xbf16, #tpu.memory_space<vmem>>, vector<1x1x1x1x8x16x8xbf16>
    %45 = vector.shape_cast %44 : vector<1x1x1x1x8x16x8xbf16> to vector<8x16x8xbf16>
    %46 = vector.shape_cast %45 : vector<8x16x8xbf16> to vector<128x8xbf16>
    %c6 = arith.constant 6 : index
    %c0_68 = arith.constant 0 : index
    %c0_69 = arith.constant 0 : index
    %47 = vector.load %arg4[%c6, %c0_68, %c0_69] : memref<9x8x128xbf16, #tpu.memory_space<vmem>>, vector<1x8x128xbf16>
    %48 = vector.shape_cast %47 : vector<1x8x128xbf16> to vector<8x128xbf16>
    %cst_70 = arith.constant dense<0.000000e+00> : vector<128x128xf32>
    %49 = tpu.matmul %46, %48, %cst_70 {dimension_numbers = #tpu.dot_dimension_numbers<[1], [0], [0], [1], [0, 0, 1, 1], [], []>} : vector<128x8xbf16>, vector<8x128xbf16>, vector<128x128xf32> -> vector<128x128xf32>
    %50 = arith.addf %36, %49 : vector<128x128xf32>
    %c0_71 = arith.constant 0 : index
    %c0_72 = arith.constant 0 : index
    %c1_73 = arith.constant 1 : index
    %c0_74 = arith.constant 0 : index
    %c1_75 = arith.constant 1 : index
    %c0_76 = arith.constant 0 : index
    %c0_77 = arith.constant 0 : index
    %51 = vector.load %arg3[%c0_71, %c0_72, %c1_73, %c0_74, %c1_75, %c0_76, %c0_77] : memref<1x2x2x1x9x16x8xbf16, #tpu.memory_space<vmem>>, vector<1x1x1x1x8x16x8xbf16>
    %52 = vector.shape_cast %51 : vector<1x1x1x1x8x16x8xbf16> to vector<8x16x8xbf16>
    %53 = vector.shape_cast %52 : vector<8x16x8xbf16> to vector<128x8xbf16>
    %c7 = arith.constant 7 : index
    %c0_78 = arith.constant 0 : index
    %c0_79 = arith.constant 0 : index
    %54 = vector.load %arg4[%c7, %c0_78, %c0_79] : memref<9x8x128xbf16, #tpu.memory_space<vmem>>, vector<1x8x128xbf16>
    %55 = vector.shape_cast %54 : vector<1x8x128xbf16> to vector<8x128xbf16>
    %cst_80 = arith.constant dense<0.000000e+00> : vector<128x128xf32>
    %56 = tpu.matmul %53, %55, %cst_80 {dimension_numbers = #tpu.dot_dimension_numbers<[1], [0], [0], [1], [0, 0, 1, 1], [], []>} : vector<128x8xbf16>, vector<8x128xbf16>, vector<128x128xf32> -> vector<128x128xf32>
    %57 = arith.addf %50, %56 : vector<128x128xf32>
    %c0_81 = arith.constant 0 : index
    %c0_82 = arith.constant 0 : index
    %c0_83 = arith.constant 0 : index
    %c0_84 = arith.constant 0 : index
    %c1_85 = arith.constant 1 : index
    %c0_86 = arith.constant 0 : index
    %c0_87 = arith.constant 0 : index
    %58 = vector.load %arg3[%c0_81, %c0_82, %c0_83, %c0_84, %c1_85, %c0_86, %c0_87] : memref<1x2x2x1x9x16x8xbf16, #tpu.memory_space<vmem>>, vector<1x1x1x1x8x16x8xbf16>
    %59 = vector.shape_cast %58 : vector<1x1x1x1x8x16x8xbf16> to vector<8x16x8xbf16>
    %60 = vector.shape_cast %59 : vector<8x16x8xbf16> to vector<128x8xbf16>
    %c8 = arith.constant 8 : index
    %c0_88 = arith.constant 0 : index
    %c0_89 = arith.constant 0 : index
    %61 = vector.load %arg4[%c8, %c0_88, %c0_89] : memref<9x8x128xbf16, #tpu.memory_space<vmem>>, vector<1x8x128xbf16>
    %62 = vector.shape_cast %61 : vector<1x8x128xbf16> to vector<8x128xbf16>
    %cst_90 = arith.constant dense<0.000000e+00> : vector<128x128xf32>
    %63 = tpu.matmul %60, %62, %cst_90 {dimension_numbers = #tpu.dot_dimension_numbers<[1], [0], [0], [1], [0, 0, 1, 1], [], []>} : vector<128x8xbf16>, vector<8x128xbf16>, vector<128x128xf32> -> vector<128x128xf32>
    %64 = arith.addf %43, %63 : vector<128x128xf32>
    %65 = vector.extract_strided_slice %64 {offsets = [1, 0], sizes = [127, 128], strides = [1, 1]} : vector<128x128xf32> to vector<127x128xf32>
    %66 = vector.extract_strided_slice %64 {offsets = [0, 0], sizes = [1, 128], strides = [1, 1]} : vector<128x128xf32> to vector<1x128xf32>
    %67 = tpu.concatenate %65, %66 in 0 : vector<127x128xf32>, vector<1x128xf32> -> vector<128x128xf32>
    %68 = arith.addf %57, %67 : vector<128x128xf32>
    %69 = vector.shape_cast %68 : vector<128x128xf32> to vector<8x16x128xf32>
    %c0_91 = arith.constant 0 : index
    %c0_92 = arith.constant 0 : index
    %c0_93 = arith.constant 0 : index
    %c0_94 = arith.constant 0 : index
    %c0_95 = arith.constant 0 : index
    %70 = vector.load %arg6[%c0_91, %c0_92, %c0_93, %c0_94, %c0_95] : memref<1x1x8x16x128xf32, #tpu.memory_space<vmem>>, vector<1x1x8x16x128xf32>
    %71 = vector.shape_cast %70 : vector<1x1x8x16x128xf32> to vector<8x16x128xf32>
    %72 = vector.shape_cast %69 : vector<8x16x128xf32> to vector<1x1x8x16x128xf32>
    tpu.vector_store %arg6[%c0_91, %c0_92, %c0_93, %c0_94, %c0_95], %72 {strides = array<i32>} : memref<1x1x8x16x128xf32, #tpu.memory_space<vmem>>, vector<1x1x8x16x128xf32>,
    return
  }
  func.func @transform_0(%arg0: i32, %arg1: i32, %arg2: i32) -> (i32, i32, i32, i32, i32, i32, i32) {
    %c0_i32 = arith.constant 0 : i32
    %c0_i32_0 = arith.constant 0 : i32
    %c0_i32_1 = arith.constant 0 : i32
    %c0_i32_2 = arith.constant 0 : i32
    %c0_i32_3 = arith.constant 0 : i32
    %c0_i32_4 = arith.constant 0 : i32
    return %arg1, %c0_i32, %c0_i32_0, %arg2, %c0_i32_1, %c0_i32_2, %c0_i32_3 : i32, i32, i32, i32, i32, i32, i32
  }
  func.func @transform_1(%arg0: i32, %arg1: i32, %arg2: i32) -> (i32, i32, i32) {
    %c0_i32 = arith.constant 0 : i32
    %c0_i32_0 = arith.constant 0 : i32
    %c0_i32_1 = arith.constant 0 : i32
    return %c0_i32, %c0_i32_0, %arg0 : i32, i32, i32
  }
  func.func @transform_2(%arg0: i32, %arg1: i32, %arg2: i32) -> (i32, i32) {
    %c0_i32 = arith.constant 0 : i32
    %c0_i32_0 = arith.constant 0 : i32
    return %c0_i32, %arg0 : i32, i32
  }
  func.func @transform_3(%arg0: i32, %arg1: i32, %arg2: i32) -> (i32, i32, i32, i32, i32) {
    %c0_i32 = arith.constant 0 : i32
    %c0_i32_0 = arith.constant 0 : i32
    %c0_i32_1 = arith.constant 0 : i32
    return %arg1, %arg2, %c0_i32, %c0_i32_0, %arg0 : i32, i32, i32, i32, i32
  }
}

</mosaic_0001>

<bundles_post_ra>
// kernel: downsample_conv2d.1
= control target key start
LH: loop header
LB: loop body
LE: loop exit
PB: predicated region body
PF: predicated region fallthrough
CT: control target
= control target key end

     0   :  { %s2059_s12 = smov 0   ;;  %s2061_s13 = smov 0   ;;  %s2480_s0 = inlined_call_operand.vmem [shape: bf16[2,2,2,1,9,16,8], index: 0, kind: input, shape index: {}]   ;;  %s2481_s1 = inlined_call_operand.vmem [shape: bf16[9,8,128], index: 1, kind: input, shape index: {}]   ;;  %s2482_s2 = inlined_call_operand.vmem [shape: f32[1,128], index: 2, kind: input, shape index: {}]   ;;  %s2483_s3 = inlined_call_operand.vmem [shape: f32[2,1,8,16,128], index: 3, kind: output, shape index: {}]  }
   0x1   :  { %s2063_s14 = smov 0  }
   0x2 LB: > { %s28_s15 = sadd.s32 1, %s2033_s13  ;;  %p1579_p0 = scmp.ge.s32.totalorder %s2037_s14, 1  ;;  %s2037_s14 = sphi %s2063_s14, %s13_s14   ;;  %s2033_s13 = sphi %s2061_s13, %s2485_s13   ;;  %s2029_s12 = sphi %s2059_s12, %s2484_s12  }
   0x3   : > { %p30_p1 = scmp.ge.s32.totalorder %s28_s15, 2  ;;  %p183_p2 = scmp.lt.s32.totalorder %s2037_s14, 3 }
   0x5   : > { %s2487_s15 = smov (%p30_p1, %s28_s15), 0  ;;  %p184_p3 = pnand %p1579_p0, %p183_p2 }
   0x6   : > { %p225_p4 = scmp.lt.s32.totalorder (!%p184_p3), %s2029_s12, 1 }
   0x7   : > { %187 = sbr.rel (%p184_p3) target bundleno = 440 (0x1b8), region = 32 }
   0xc   : > { %v274_v0 = vld [vmem:[%s2481_s1] sm:$0xf]  ;;  %vm340_vm0 = vcmask 1043456   ;;  %v1697_v2 = vld [vmem:[%s2481_s1 + $0xc] sm:$0xf]  ;;  %s2489_s12 = smov (!%p225_p4, %s2029_s12), 1 }
   0xd   : > { %v342_v1 = vsel %vm340_vm0, %v274_v0, 0  ;;  %v1754_v3 = vld [vmem:[%s2481_s1 + $0x10] sm:$0xf]  ;;  %v646_v4 = vsel %vm340_vm0, %v1697_v2, 0  ;;  %v1639_v6 = vld [vmem:[%s2481_s1 + $0x4] sm:$0xf] }
   0xe   : > { %351 = vmatpush.bf16.msra.mxu0 %v342_v1  ;;  %1986 = vmatpush.bf16.msra.mxu1 %v342_v1  ;;  %v797_v5 = vsel %vm340_vm0, %v1754_v3, 0  ;;  %v493_v7 = vsel %vm340_vm0, %v1639_v6, 0  ;;  %v1795_v8 = vld [vmem:[%s2481_s1 + $0x14] sm:$0xf]  ;;  %s1989_s26 = smul.u32 288, %s2489_s12  ;;  %vm315_vm1 = vcmask 64512  }
   0xf   : > { %1987 = vmatpush.bf16.msra.mxu2 %v342_v1  ;;  %1988 = vmatpush.bf16.msra.mxu3 %v342_v1  ;;  %v867_v9 = vsel %vm340_vm0, %v1795_v8, 0  ;;  %v1828_v14 = vld [vmem:[%s2481_s1 + $0x18] sm:$0xf]  ;;  %v1885_v16 = vld [vmem:[%s2481_s1 + $0x1c] sm:$0xf]  ;;  %s1937_s17 = sshll.u32 %s2489_s12, 7 }
  0x10   : > { %s2103_s29 = scalar_lea.vmem %s2480_s0, %s1989_s26  ;;  %v1054_v15 = vsel %vm340_vm0, %v1828_v14, 0  ;;  %v1680_v17 = vld [vmem:[%s2481_s1 + $0x8] sm:$0xf]  ;;  %v1205_v18 = vsel %vm340_vm0, %v1885_v16, 0  ;;  %v1926_v20 = vld [vmem:[%s2481_s1 + $0x20] sm:$0xf]  ;;  %s2404_s20 = scalar_lea.vmem %s2483_s3, %s1937_s17 }
  0x11   : > { %v2106_v10 = vld [vmem:[%s2103_s29] sm:$0xff]  ;;  %v2109_v11 = vld [vmem:[%s2103_s29 + $0x10] sm:$0xff]  ;;  %v919_v19 = vsel %vm340_vm0, %v1680_v17, 0  ;;  %v1275_v21 = vsel %vm340_vm0, %v1926_v20, 0  ;;  %v2142_v22 = vld [vmem:[%s2103_s29 + $0x8] sm:$0xff]  ;;  %vm1358_vm2 = vcmask 1046528  }
  0x12   : > { %502 = vmatpush.bf16.msrb.mxu1 %v493_v7  ;;  %876 = vmatpush.bf16.msrb.mxu0 %v867_v9  ;;  %v2112_v12 = vld [vmem:[%s2103_s29 + $0x20] sm:$0xff]  ;;  %v2115_v13 = vld [vmem:[%s2103_s29 + $0x30] sm:$0xff]  ;;  %v2145_v23 = vld [vmem:[%s2103_s29 + $0x18] sm:$0xff] }
  0x13   : > { %655 = vmatpush.bf16.msrb.mxu2 %v646_v4  ;;  %806 = vmatpush.bf16.msrb.mxu3 %v797_v5  ;;  %v2148_v24 = vld [vmem:[%s2103_s29 + $0x28] sm:$0xff]  ;;  %v2151_v25 = vld [vmem:[%s2103_s29 + $0x38] sm:$0xff]  ;;  %v1954_v27 = vld [vmem:[%s2103_s29 + $0x90] sm:$0xff] }
  0x14   : > { %1615 = vmatmul.msk.bf16.vlgmr.msra.gmra.mxu0 %vm315_vm1, %v2106_v10  ;;  %1617 = vmatmul.msk.bf16.vlgmr.msra.gmra.mxu1 %vm315_vm1, %v2109_v11  ;;  %v1946_v26 = vld [vmem:[%s2103_s29 + $0x48] sm:$0xff]  ;;  %v1962_v28 = vld [vmem:[%s2103_s29 + $0xd8] sm:$0xff]  ;;  %v1947_v29 = vld [vmem:[%s2103_s29 + $0x50] sm:$0xff] }
  0x15   : > { %1619 = vmatmul.msk.bf16.vlgmr.msra.gmra.mxu2 %vm315_vm1, %v2112_v12  ;;  %1621 = vmatmul.msk.bf16.vlgmr.msra.gmra.mxu3 %vm315_vm1, %v2115_v13  ;;  %v1955_v30 = vld [vmem:[%s2103_s29 + $0x98] sm:$0xff]  ;;  %v1963_v31 = vld [vmem:[%s2103_s29 + $0xe0] sm:$0xff]  ;;  %v1964_v34 = vld [vmem:[%s2103_s29 + $0xe8] sm:$0xff] }
  0x16   : > { %928 = vmatpush.bf16.msra.mxu1 %v919_v19  ;;  %1284 = vmatpush.bf16.msra.mxu0 %v1275_v21  ;;  %v1948_v32 = vld [vmem:[%s2103_s29 + $0x58] sm:$0xff]  ;;  %v1956_v33 = vld [vmem:[%s2103_s29 + $0xa0] sm:$0xff]  ;;  %v1957_v36 = vld [vmem:[%s2103_s29 + $0xa8] sm:$0xff] }
  0x17   : > { %1063 = vmatpush.bf16.msra.mxu2 %v1054_v15  ;;  %1214 = vmatpush.bf16.msra.mxu3 %v1205_v18  ;;  %v1949_v35 = vld [vmem:[%s2103_s29 + $0x60] sm:$0xff]  ;;  %v1965_v37 = vld [vmem:[%s2103_s29 + $0xf0] sm:$0xff]  ;;  %v1950_v38 = vld [vmem:[%s2103_s29 + $0x68] sm:$0xff] }
  0x18   : > { %v1958_v39 = vld [vmem:[%s2103_s29 + $0xb0] sm:$0xff]  ;;  %v1966_v40 = vld [vmem:[%s2103_s29 + $0xf8] sm:$0xff]  ;;  %v1967_v43 = vld [vmem:[%s2103_s29 + $0x100] sm:$0xff] }
  0x19   : > { %v1951_v41 = vld [vmem:[%s2103_s29 + $0x70] sm:$0xff]  ;;  %v1959_v42 = vld [vmem:[%s2103_s29 + $0xb8] sm:$0xff]  ;;  %v1960_v45 = vld [vmem:[%s2103_s29 + $0xc0] sm:$0xff] }
  0x1a   : > { %v1952_v44 = vld [vmem:[%s2103_s29 + $0x78] sm:$0xff]  ;;  %v1968_v48 = vld [vmem:[%s2103_s29 + $0x108] sm:$0xff]  ;;  %v2215_v49 = vld [vmem:[%s2482_s2] ss:$0 sm:$0xff] }
  0x1b   : > { %v1953_v58 = vld [vmem:[%s2103_s29 + $0x80] sm:$0xff]  ;;  %v1961_v59 = vld [vmem:[%s2103_s29 + $0xc8] sm:$0xff]  ;;  %v1969_v0 = vld [vmem:[%s2103_s29 + $0x110] sm:$0xff] }
  0x1c   : > { %v1970_v14 = vld [vmem:[%s2103_s29 + $0x8] sm:$0xff]  ;;  %v1978_v19 = vld [vmem:[%s2103_s29 + $0x50] sm:$0xff] }
  0x24   : > { %1616 = vmatmul.msk.bf16.gmra.mxu0 %vm315_vm1, %v2142_v22  ;;  %1618 = vmatmul.msk.bf16.gmra.mxu1 %vm315_vm1, %v2145_v23 }
  0x25   : > { %1620 = vmatmul.msk.bf16.gmra.mxu2 %vm315_vm1, %v2148_v24  ;;  %1622 = vmatmul.msk.bf16.gmra.mxu3 %vm315_vm1, %v2151_v25 }
  0x34   : > { %1672 = vmatmul.msk.bf16.vlgmr.msrb.gmra.mxu1 %vm315_vm1, %v1946_v26  ;;  %1796 = vmatmul.msk.bf16.vlgmr.msrb.gmra.mxu0 %vm315_vm1, %v1954_v27 }
  0x35   : > { %1730 = vmatmul.msk.bf16.vlgmr.msrb.gmra.mxu2 %vm315_vm1, %v1954_v27  ;;  %1787 = vmatmul.msk.bf16.vlgmr.msrb.gmra.mxu3 %vm315_vm1, %v1962_v28 }
  0x44   : > { %1673 = vmatmul.msk.bf16.gmra.mxu1 %vm315_vm1, %v1947_v29  ;;  %1797 = vmatmul.msk.bf16.gmra.mxu0 %vm315_vm1, %v1955_v30 }
  0x45   : > { %1731 = vmatmul.msk.bf16.gmra.mxu2 %vm315_vm1, %v1955_v30  ;;  %1788 = vmatmul.msk.bf16.gmra.mxu3 %vm315_vm1, %v1963_v31 }
  0x54   : > { %1674 = vmatmul.msk.bf16.gmra.mxu1 %vm315_vm1, %v1948_v32  ;;  %1798 = vmatmul.msk.bf16.gmra.mxu0 %vm315_vm1, %v1956_v33 }
  0x55   : > { %1732 = vmatmul.msk.bf16.gmra.mxu2 %vm315_vm1, %v1956_v33  ;;  %1789 = vmatmul.msk.bf16.gmra.mxu3 %vm315_vm1, %v1964_v34 }
  0x64   : > { %1675 = vmatmul.msk.bf16.gmra.mxu1 %vm315_vm1, %v1949_v35  ;;  %1799 = vmatmul.msk.bf16.gmra.mxu0 %vm315_vm1, %v1957_v36  ;;  %v1971_v35 = vld [vmem:[%s2103_s29 + $0x10] sm:$0xff] }
  0x65   : > { %1733 = vmatmul.msk.bf16.gmra.mxu2 %vm315_vm1, %v1957_v36  ;;  %1790 = vmatmul.msk.bf16.gmra.mxu3 %vm315_vm1, %v1965_v37 }
  0x74   : > { %1676 = vmatmul.msk.bf16.gmra.mxu1 %vm315_vm1, %v1950_v38  ;;  %1800 = vmatmul.msk.bf16.gmra.mxu0 %vm315_vm1, %v1958_v39 }
  0x75   : > { %1734 = vmatmul.msk.bf16.gmra.mxu2 %vm315_vm1, %v1958_v39  ;;  %1791 = vmatmul.msk.bf16.gmra.mxu3 %vm315_vm1, %v1966_v40  ;;  %v1979_v39 = vld [vmem:[%s2103_s29 + $0x58] sm:$0xff] }
  0x84   : > { %1677 = vmatmul.msk.bf16.gmra.mxu1 %vm315_vm1, %v1951_v41  ;;  %1801 = vmatmul.msk.bf16.gmra.mxu0 %vm315_vm1, %v1959_v42 }
  0x85   : > { %1735 = vmatmul.msk.bf16.gmra.mxu2 %vm315_vm1, %v1959_v42  ;;  %1792 = vmatmul.msk.bf16.gmra.mxu3 %vm315_vm1, %v1967_v43 }
  0x91   : > { %v353_v46 = vpop.f32.mrf.mxu0  ;;  %v2205_v47 = vpop.f32.mrf.mxu1 }
  0x92   : > { %v393_v7 = vadd.f32 %v2215_v49, %v353_v46 }
  0x94   : > { %1678 = vmatmul.msk.bf16.gmra.mxu1 %vm315_vm1, %v1952_v44  ;;  %1802 = vmatmul.msk.bf16.gmra.mxu0 %vm315_vm1, %v1960_v45 }
  0x95   : > { %1736 = vmatmul.msk.bf16.gmra.mxu2 %vm315_vm1, %v1960_v45  ;;  %1793 = vmatmul.msk.bf16.gmra.mxu3 %vm315_vm1, %v1968_v48 }
  0x98   : > { %v373_v50 = vpop.f32.mrf.mxu2  ;;  %v383_v51 = vpop.f32.mrf.mxu3 }
  0x99   : > { %v2218_v52 = vadd.f32 %v2215_v49, %v373_v50  ;;  %v2221_v53 = vadd.f32 %v2215_v49, %v383_v51  ;;  %v355_v54 = vpop.f32.mrf.mxu0  ;;  %v2223_v55 = vpop.f32.mrf.mxu1 }
  0x9a   : > { %v394_v21 = vadd.f32 %v2215_v49, %v355_v54 }
  0xa0   : > { %v375_v56 = vpop.f32.mrf.mxu2  ;;  %v385_v57 = vpop.f32.mrf.mxu3 }
  0xa1   : > { %v2228_v60 = vadd.f32 %v2215_v49, %v375_v56  ;;  %v2231_v61 = vadd.f32 %v2215_v49, %v385_v57  ;;  %v358_v62 = vpop.f32.mrf.mxu0  ;;  %v2233_v63 = vpop.f32.mrf.mxu1  ;;  %v1972_v57 = vld [vmem:[%s2103_s29 + $0x18] sm:$0xff] }
  0xa4   : > { %1679 = vmatmul.msk.bf16.gmra.mxu1 %vm315_vm1, %v1953_v58  ;;  %1803 = vmatmul.msk.bf16.gmra.mxu0 %vm315_vm1, %v1961_v59 }
  0xa5   : > { %1737 = vmatmul.msk.bf16.gmra.mxu2 %vm315_vm1, %v1961_v59  ;;  %1794 = vmatmul.msk.bf16.gmra.mxu3 %vm315_vm1, %v1969_v0  ;;  %v1980_v0 = vld [vmem:[%s2103_s29 + $0x60] sm:$0xff] }
  0xa8   : > { %v378_v1 = vpop.f32.mrf.mxu2  ;;  %v388_v2 = vpop.f32.mrf.mxu3 }
  0xa9   : > { %v2241_v3 = vadd.f32 %v2215_v49, %v378_v1  ;;  %v2244_v4 = vadd.f32 %v2215_v49, %v388_v2  ;;  %v360_v5 = vpop.f32.mrf.mxu0  ;;  %v2246_v6 = vpop.f32.mrf.mxu1 }
  0xaa   : > { %v396_v42 = vadd.f32 %v2215_v49, %v360_v5 }
  0xb0   : > { %v380_v8 = vpop.f32.mrf.mxu2  ;;  %v390_v9 = vpop.f32.mrf.mxu3 }
  0xb1   : > { %v2251_v15 = vadd.f32 %v2215_v49, %v380_v8  ;;  %v2254_v16 = vadd.f32 %v2215_v49, %v390_v9  ;;  %v504_v17 = vpop.f32.mrf.mxu1  ;;  %v2256_v18 = vpop.f32.mrf.mxu0 }
  0xb2   : > { %v544_v20 = vadd.f32 %v504_v17, %v393_v7 }
  0xb4   : > { %1804 = vmatmul.msk.bf16.vlgmr.msra.gmra.mxu1 %vm315_vm1, %v2106_v10  ;;  %1927 = vmatmul.msk.bf16.vlgmr.msra.gmra.mxu0 %vm315_vm1, %v1970_v14  ;;  %v395_v10 = vadd.f32 %v2215_v49, %v358_v62 }
  0xb5   : > { %1861 = vmatmul.msk.bf16.vlgmr.msra.gmra.mxu2 %vm315_vm1, %v1970_v14  ;;  %1918 = vmatmul.msk.bf16.vlgmr.msra.gmra.mxu3 %vm315_vm1, %v1978_v19 }
  0xb8   : > { %v657_v26 = vpop.f32.mrf.mxu2  ;;  %v808_v27 = vpop.f32.mrf.mxu3 }
  0xb9   : > { %v697_v28 = vadd.f32 %v657_v26, %v544_v20  ;;  %v506_v29 = vpop.f32.mrf.mxu1  ;;  %v2265_v30 = vpop.f32.mrf.mxu0  ;;  %v1973_v26 = vld [vmem:[%s2103_s29 + $0x20] sm:$0xff] }
  0xba   : > { %v545_v31 = vadd.f32 %v506_v29, %v394_v21 }
  0xbb   : > { %v2267_v32 = vadd.f32 %v808_v27, %v697_v28 }
  0xc0   : > { %v659_v33 = vpop.f32.mrf.mxu2  ;;  %v810_v34 = vpop.f32.mrf.mxu3 }
  0xc1   : > { %v698_v36 = vadd.f32 %v659_v33, %v545_v31  ;;  %v509_v37 = vpop.f32.mrf.mxu1  ;;  %v2271_v38 = vpop.f32.mrf.mxu0 }
  0xc2   : > { %v546_v40 = vadd.f32 %v509_v37, %v395_v10 }
  0xc3   : > { %v2274_v41 = vadd.f32 %v810_v34, %v698_v36 }
  0xc4   : > { %1805 = vmatmul.msk.bf16.gmra.mxu1 %vm315_vm1, %v2142_v22  ;;  %1928 = vmatmul.msk.bf16.gmra.mxu0 %vm315_vm1, %v1971_v35  ;;  %v397_v22 = vadd.f32 %v2215_v49, %v2205_v47  ;;  %v398_v47 = vadd.f32 %v2215_v49, %v2223_v55  ;;  %v1981_v55 = vld [vmem:[%s2103_s29 + $0x68] sm:$0xff] }
  0xc5   : > { %1862 = vmatmul.msk.bf16.gmra.mxu2 %vm315_vm1, %v1971_v35  ;;  %1919 = vmatmul.msk.bf16.gmra.mxu3 %vm315_vm1, %v1979_v39 }
  0xc8   : > { %v662_v43 = vpop.f32.mrf.mxu2  ;;  %v813_v44 = vpop.f32.mrf.mxu3 }
  0xc9   : > { %v699_v45 = vadd.f32 %v662_v43, %v546_v40  ;;  %v511_v46 = vpop.f32.mrf.mxu1  ;;  %v2282_v48 = vpop.f32.mrf.mxu0  ;;  %v1974_v43 = vld [vmem:[%s2103_s29 + $0x28] sm:$0xff] }
  0xca   : > { %v547_v50 = vadd.f32 %v511_v46, %v396_v42 }
  0xcb   : > { %v2284_v51 = vadd.f32 %v813_v44, %v699_v45 }
  0xd0   : > { %v664_v54 = vpop.f32.mrf.mxu2  ;;  %v815_v56 = vpop.f32.mrf.mxu3 }
  0xd1   : > { %v700_v58 = vadd.f32 %v664_v54, %v547_v50  ;;  %v514_v59 = vpop.f32.mrf.mxu1  ;;  %v2289_v62 = vpop.f32.mrf.mxu0  ;;  %v1982_v50 = vld [vmem:[%s2103_s29 + $0x70] sm:$0xff] }
  0xd2   : > { %v548_v1 = vadd.f32 %v514_v59, %v397_v22 }
  0xd3   : > { %v2292_v2 = vadd.f32 %v815_v56, %v700_v58 }
  0xd4   : > { %1806 = vmatmul.msk.bf16.gmra.mxu1 %vm315_vm1, %v2109_v11  ;;  %1929 = vmatmul.msk.bf16.gmra.mxu0 %vm315_vm1, %v1972_v57  ;;  %v399_v11 = vadd.f32 %v2215_v49, %v2233_v63  ;;  %v400_v63 = vadd.f32 %v2215_v49, %v2246_v6 }
  0xd5   : > { %1863 = vmatmul.msk.bf16.gmra.mxu2 %vm315_vm1, %v1972_v57  ;;  %1920 = vmatmul.msk.bf16.gmra.mxu3 %vm315_vm1, %v1980_v0 }
  0xd8   : > { %v667_v5 = vpop.f32.mrf.mxu2  ;;  %v818_v7 = vpop.f32.mrf.mxu3 }
  0xd9   : > { %v701_v8 = vadd.f32 %v667_v5, %v548_v1  ;;  %v516_v9 = vpop.f32.mrf.mxu1  ;;  %v2301_v14 = vpop.f32.mrf.mxu0 }
  0xda   : > { %v549_v17 = vadd.f32 %v516_v9, %v398_v47 }
  0xdb   : > { %v2303_v19 = vadd.f32 %v818_v7, %v701_v8  ;;  %v1983_v8 = vld [vmem:[%s2103_s29 + $0x78] sm:$0xff] }
  0xe0   : > { %v669_v20 = vpop.f32.mrf.mxu2  ;;  %v820_v21 = vpop.f32.mrf.mxu3 }
  0xe1   : > { %v702_v27 = vadd.f32 %v669_v20, %v549_v17  ;;  %v519_v28 = vpop.f32.mrf.mxu1  ;;  %v2308_v29 = vpop.f32.mrf.mxu0 }
  0xe2   : > { %v550_v31 = vadd.f32 %v519_v28, %v399_v11 }
  0xe3   : > { %v2311_v10 = vadd.f32 %v820_v21, %v702_v27 }
  0xe4   : > { %1807 = vmatmul.msk.bf16.gmra.mxu1 %vm315_vm1, %v2145_v23  ;;  %1930 = vmatmul.msk.bf16.gmra.mxu0 %vm315_vm1, %v1973_v26 }
  0xe5   : > { %1864 = vmatmul.msk.bf16.gmra.mxu2 %vm315_vm1, %v1973_v26  ;;  %1921 = vmatmul.msk.bf16.gmra.mxu3 %vm315_vm1, %v1981_v55 }
  0xe8   : > { %v672_v33 = vpop.f32.mrf.mxu2  ;;  %v823_v34 = vpop.f32.mrf.mxu3 }
  0xe9   : > { %v703_v35 = vadd.f32 %v672_v33, %v550_v31  ;;  %v521_v36 = vpop.f32.mrf.mxu1  ;;  %v2320_v37 = vpop.f32.mrf.mxu0 }
  0xea   : > { %v551_v39 = vadd.f32 %v521_v36, %v400_v63 }
  0xeb   : > { %v2322_v40 = vadd.f32 %v823_v34, %v703_v35  ;;  %v1984_v34 = vld [vmem:[%s2103_s29 + $0x80] sm:$0xff] }
  0xf0   : > { %v674_v23 = vpop.f32.mrf.mxu2  ;;  %v825_v42 = vpop.f32.mrf.mxu3 }
  0xf1   : > { %v704_v44 = vadd.f32 %v674_v23, %v551_v39  ;;  %v524_v45 = vpop.f32.mrf.mxu1  ;;  %v2325_v46 = vpop.f32.mrf.mxu0 }
  0xf2   : > { %v552_v49 = vadd.f32 %v524_v45, %v2218_v52 }
  0xf3   : > { %v2329_v6 = vadd.f32 %v825_v42, %v704_v44 }
  0xf4   : > { %1808 = vmatmul.msk.bf16.gmra.mxu1 %vm315_vm1, %v2112_v12  ;;  %1931 = vmatmul.msk.bf16.gmra.mxu0 %vm315_vm1, %v1974_v43  ;;  %v1975_v12 = vld [vmem:[%s2103_s29 + $0x30] sm:$0xff] }
  0xf5   : > { %1865 = vmatmul.msk.bf16.gmra.mxu2 %vm315_vm1, %v1974_v43  ;;  %1922 = vmatmul.msk.bf16.gmra.mxu3 %vm315_vm1, %v1982_v50 }
  0xf8   : > { %v677_v22 = vpop.f32.mrf.mxu2  ;;  %v828_v54 = vpop.f32.mrf.mxu3 }
  0xf9   : > { %v705_v56 = vadd.f32 %v677_v22, %v552_v49  ;;  %v526_v57 = vpop.f32.mrf.mxu1  ;;  %v2336_v58 = vpop.f32.mrf.mxu0 }
  0xfa   : > { %v553_v52 = vadd.f32 %v526_v57, %v2228_v60 }
  0xfb   : > { %v2339_v59 = vadd.f32 %v828_v54, %v705_v56  ;;  %v1985_v56 = vld [vmem:[%s2103_s29 + $0x88] sm:$0xff] }
 0x100   : > { %v679_v0 = vpop.f32.mrf.mxu2  ;;  %v830_v1 = vpop.f32.mrf.mxu3 }
 0x101   : > { %v706_v47 = vadd.f32 %v679_v0, %v553_v52  ;;  %v529_v5 = vpop.f32.mrf.mxu1  ;;  %v2342_v7 = vpop.f32.mrf.mxu0 }
 0x102   : > { %v554_v9 = vadd.f32 %v529_v5, %v2241_v3 }
 0x103   : > { %v2346_v17 = vadd.f32 %v830_v1, %v706_v47 }
 0x104   : > { %1809 = vmatmul.msk.bf16.gmra.mxu1 %vm315_vm1, %v2148_v24  ;;  %1932 = vmatmul.msk.bf16.gmra.mxu0 %vm315_vm1, %v1975_v12  ;;  %v1976_v24 = vld [vmem:[%s2103_s29 + $0x38] sm:$0xff] }
 0x105   : > { %1866 = vmatmul.msk.bf16.gmra.mxu2 %vm315_vm1, %v1975_v12  ;;  %1923 = vmatmul.msk.bf16.gmra.mxu3 %vm315_vm1, %v1983_v8 }
 0x108   : > { %v682_v60 = vpop.f32.mrf.mxu2  ;;  %v833_v11 = vpop.f32.mrf.mxu3 }
 0x109   : > { %v707_v20 = vadd.f32 %v682_v60, %v554_v9  ;;  %v531_v21 = vpop.f32.mrf.mxu1  ;;  %v2353_v26 = vpop.f32.mrf.mxu0 }
 0x10a   : > { %v555_v3 = vadd.f32 %v531_v21, %v2251_v15 }
 0x10b   : > { %v2356_v27 = vadd.f32 %v833_v11, %v707_v20 }
 0x110   : > { %v684_v28 = vpop.f32.mrf.mxu2  ;;  %v835_v55 = vpop.f32.mrf.mxu3 }
 0x111   : > { %v708_v31 = vadd.f32 %v684_v28, %v555_v3  ;;  %v534_v63 = vpop.f32.mrf.mxu1  ;;  %v2359_v33 = vpop.f32.mrf.mxu0 }
 0x112   : > { %v556_v35 = vadd.f32 %v534_v63, %v2221_v53 }
 0x113   : > { %v2363_v36 = vadd.f32 %v835_v55, %v708_v31 }
 0x114   : > { %1810 = vmatmul.msk.bf16.gmra.mxu1 %vm315_vm1, %v2115_v13  ;;  %1933 = vmatmul.msk.bf16.gmra.mxu0 %vm315_vm1, %v1976_v24  ;;  %v1977_v13 = vld [vmem:[%s2103_s29 + $0x40] sm:$0xff] }
 0x115   : > { %1867 = vmatmul.msk.bf16.gmra.mxu2 %vm315_vm1, %v1976_v24  ;;  %1924 = vmatmul.msk.bf16.gmra.mxu3 %vm315_vm1, %v1984_v34 }
 0x118   : > { %v687_v15 = vpop.f32.mrf.mxu2  ;;  %v838_v39 = vpop.f32.mrf.mxu3 }
 0x119   : > { %v709_v23 = vadd.f32 %v687_v15, %v556_v35  ;;  %v536_v42 = vpop.f32.mrf.mxu1  ;;  %v2370_v43 = vpop.f32.mrf.mxu0 }
 0x11a   : > { %v557_v53 = vadd.f32 %v536_v42, %v2231_v61 }
 0x11b   : > { %v2373_v44 = vadd.f32 %v838_v39, %v709_v23 }
 0x120   : > { %v689_v45 = vpop.f32.mrf.mxu2  ;;  %v840_v50 = vpop.f32.mrf.mxu3 }
 0x121   : > { %v710_v49 = vadd.f32 %v689_v45, %v557_v53  ;;  %v539_v22 = vpop.f32.mrf.mxu1  ;;  %v2376_v54 = vpop.f32.mrf.mxu0 }
 0x122   : > { %v558_v57 = vadd.f32 %v539_v22, %v2244_v4 }
 0x123   : > { %v2380_v52 = vadd.f32 %v840_v50, %v710_v49 }
 0x124   : > { %1811 = vmatmul.msk.bf16.gmra.mxu1 %vm315_vm1, %v2151_v25  ;;  %1934 = vmatmul.msk.bf16.gmra.mxu0 %vm315_vm1, %v1977_v13 }
 0x125   : > { %1868 = vmatmul.msk.bf16.gmra.mxu2 %vm315_vm1, %v1977_v13  ;;  %1925 = vmatmul.msk.bf16.gmra.mxu3 %vm315_vm1, %v1985_v56 }
 0x128   : > { %v692_v61 = vpop.f32.mrf.mxu2  ;;  %v843_v0 = vpop.f32.mrf.mxu3 }
 0x129   : > { %v711_v1 = vadd.f32 %v692_v61, %v558_v57  ;;  %v541_v12 = vpop.f32.mrf.mxu1  ;;  %v2387_v47 = vpop.f32.mrf.mxu0 }
 0x12a   : > { %v559_v5 = vadd.f32 %v541_v12, %v2254_v16 }
 0x12b   : > { %v2390_v4 = vadd.f32 %v843_v0, %v711_v1 }
 0x130   : > { %v694_v8 = vpop.f32.mrf.mxu2  ;;  %v845_v9 = vpop.f32.mrf.mxu3 }
 0x131   : > { %v712_v25 = vadd.f32 %v694_v8, %v559_v5  ;;  %v930_v60 = vpop.f32.mrf.mxu1  ;;  %v1286_v11 = vpop.f32.mrf.mxu0 }
 0x132   : > { %v931_v21 = vadd.f32 %v930_v60, %v2256_v18 }
 0x133   : > { %v2392_v20 = vadd.f32 %v845_v9, %v712_v25 }
 0x134   : > { %v2395_v31 = vadd.f32 %v1286_v11, %v931_v21 }
 0x136   : > { %v1359_v35 = vrot.slane %v2395_v31, 1 }
 0x138   : > { %v1065_v3 = vpop.f32.mrf.mxu2  ;;  %v1216_v28 = vpop.f32.mrf.mxu3 }
 0x139   : > { %v932_v55 = vpop.f32.mrf.mxu1  ;;  %v1288_v24 = vpop.f32.mrf.mxu0  ;;  %v1105_v63 = vadd.f32 %v1065_v3, %v2267_v32 }
 0x13a   : > { %v933_v16 = vadd.f32 %v932_v55, %v2265_v30 }
 0x13b   : > { %v1256_v39 = vadd.f32 %v1216_v28, %v1105_v63 }
 0x13c   : > { %v1327_v34 = vadd.f32 %v1288_v24, %v933_v16 }
 0x13e   : > { %v1360_v15 = vrot.slane %v1327_v34, 1 }
 0x140   : > { %v1361_v18 = vsel %vm1358_vm2, %v1359_v35, %v1360_v15  ;;  %v1067_v30 = vpop.f32.mrf.mxu2  ;;  %v1218_v23 = vpop.f32.mrf.mxu3 }
 0x141   : > { %v1408_v32 = vadd.f32 %v1361_v18, %v1256_v39  ;;  %v935_v42 = vpop.f32.mrf.mxu1  ;;  %v1291_v53 = vpop.f32.mrf.mxu0  ;;  %v1106_v50 = vadd.f32 %v1067_v30, %v2274_v41 }
 0x142   : > { %v936_v45 = vadd.f32 %v935_v42, %v2271_v38 }
 0x143   : > { %1424 = vst [vmem:[%s2404_s20] sm:$0xff] %v1408_v32  ;;  %v1257_v22 = vadd.f32 %v1218_v23, %v1106_v50 }
 0x144   : > { %v1328_v13 = vadd.f32 %v1291_v53, %v936_v45 }
 0x146   : > { %v1362_v49 = vrot.slane %v1328_v13, 1 }
 0x148   : > { %v1363_v56 = vsel %vm1358_vm2, %v1360_v15, %v1362_v49  ;;  %v1070_v57 = vpop.f32.mrf.mxu2  ;;  %v1221_v61 = vpop.f32.mrf.mxu3 }
 0x149   : > { %v1409_v0 = vadd.f32 %v1363_v56, %v1257_v22  ;;  %v937_v1 = vpop.f32.mrf.mxu1  ;;  %v1293_v12 = vpop.f32.mrf.mxu0  ;;  %v1107_v8 = vadd.f32 %v1070_v57, %v2284_v51 }
 0x14a   : > { %v938_v5 = vadd.f32 %v937_v1, %v2282_v48 }
 0x14b   : > { %1425 = vst [vmem:[%s2404_s20 + $0x8] sm:$0xff] %v1409_v0  ;;  %v1258_v25 = vadd.f32 %v1221_v61, %v1107_v8 }
 0x14c   : > { %v1329_v38 = vadd.f32 %v1293_v12, %v938_v5 }
 0x14e   : > { %v1364_v9 = vrot.slane %v1329_v38, 1 }
 0x150   : > { %v1365_v41 = vsel %vm1358_vm2, %v1362_v49, %v1364_v9  ;;  %v1072_v60 = vpop.f32.mrf.mxu2  ;;  %v1223_v11 = vpop.f32.mrf.mxu3 }
 0x151   : > { %v1410_v21 = vadd.f32 %v1365_v41, %v1258_v25  ;;  %v940_v3 = vpop.f32.mrf.mxu1  ;;  %v1296_v28 = vpop.f32.mrf.mxu0  ;;  %v1108_v24 = vadd.f32 %v1072_v60, %v2292_v2 }
 0x152   : > { %v941_v55 = vadd.f32 %v940_v3, %v2289_v62 }
 0x153   : > { %1426 = vst [vmem:[%s2404_s20 + $0x10] sm:$0xff] %v1410_v21  ;;  %v1259_v63 = vadd.f32 %v1223_v11, %v1108_v24 }
 0x154   : > { %v1330_v48 = vadd.f32 %v1296_v28, %v941_v55 }
 0x156   : > { %v1366_v16 = vrot.slane %v1330_v48, 1 }
 0x158   : > { %v1367_v51 = vsel %vm1358_vm2, %v1364_v9, %v1366_v16  ;;  %v1075_v34 = vpop.f32.mrf.mxu2  ;;  %v1226_v15 = vpop.f32.mrf.mxu3 }
 0x159   : > { %v1411_v39 = vadd.f32 %v1367_v51, %v1259_v63  ;;  %v942_v18 = vpop.f32.mrf.mxu1  ;;  %v1298_v30 = vpop.f32.mrf.mxu0  ;;  %v1109_v32 = vadd.f32 %v1075_v34, %v2303_v19 }
 0x15a   : > { %v943_v23 = vadd.f32 %v942_v18, %v2301_v14 }
 0x15b   : > { %1427 = vst [vmem:[%s2404_s20 + $0x18] sm:$0xff] %v1411_v39  ;;  %v1260_v53 = vadd.f32 %v1226_v15, %v1109_v32 }
 0x15c   : > { %v1331_v62 = vadd.f32 %v1298_v30, %v943_v23 }
 0x15e   : > { %v1368_v42 = vrot.slane %v1331_v62, 1 }
 0x160   : > { %v1369_v2 = vsel %vm1358_vm2, %v1366_v16, %v1368_v42  ;;  %v1077_v45 = vpop.f32.mrf.mxu2  ;;  %v1228_v50 = vpop.f32.mrf.mxu3 }
 0x161   : > { %v1412_v13 = vadd.f32 %v1369_v2, %v1260_v53  ;;  %v945_v49 = vpop.f32.mrf.mxu1  ;;  %v1301_v22 = vpop.f32.mrf.mxu0  ;;  %v1110_v57 = vadd.f32 %v1077_v45, %v2311_v10 }
 0x162   : > { %v946_v56 = vadd.f32 %v945_v49, %v2308_v29 }
 0x163   : > { %1428 = vst [vmem:[%s2404_s20 + $0x20] sm:$0xff] %v1412_v13  ;;  %v1261_v0 = vadd.f32 %v1228_v50, %v1110_v57 }
 0x164   : > { %v1332_v14 = vadd.f32 %v1301_v22, %v946_v56 }
 0x166   : > { %v1370_v61 = vrot.slane %v1332_v14, 1 }
 0x168   : > { %v1371_v19 = vsel %vm1358_vm2, %v1368_v42, %v1370_v61  ;;  %v1080_v1 = vpop.f32.mrf.mxu2  ;;  %v1231_v12 = vpop.f32.mrf.mxu3 }
 0x169   : > { %v1413_v5 = vadd.f32 %v1371_v19, %v1261_v0  ;;  %v947_v8 = vpop.f32.mrf.mxu1  ;;  %v1303_v38 = vpop.f32.mrf.mxu0  ;;  %v1111_v25 = vadd.f32 %v1080_v1, %v2322_v40 }
 0x16a   : > { %v948_v9 = vadd.f32 %v947_v8, %v2320_v37 }
 0x16b   : > { %1429 = vst [vmem:[%s2404_s20 + $0x28] sm:$0xff] %v1413_v5  ;;  %v1262_v60 = vadd.f32 %v1231_v12, %v1111_v25 }
 0x16c   : > { %v1333_v29 = vadd.f32 %v1303_v38, %v948_v9 }
 0x16e   : > { %v1372_v41 = vrot.slane %v1333_v29, 1 }
 0x170   : > { %v1373_v10 = vsel %vm1358_vm2, %v1370_v61, %v1372_v41  ;;  %v1082_v11 = vpop.f32.mrf.mxu2  ;;  %v1233_v21 = vpop.f32.mrf.mxu3 }
 0x171   : > { %v1414_v3 = vadd.f32 %v1373_v10, %v1262_v60  ;;  %v950_v28 = vpop.f32.mrf.mxu1  ;;  %v1306_v55 = vpop.f32.mrf.mxu0  ;;  %v1112_v48 = vadd.f32 %v1082_v11, %v2329_v6 }
 0x172   : > { %v951_v24 = vadd.f32 %v950_v28, %v2325_v46 }
 0x173   : > { %1430 = vst [vmem:[%s2404_s20 + $0x30] sm:$0xff] %v1414_v3  ;;  %v1263_v63 = vadd.f32 %v1233_v21, %v1112_v48 }
 0x174   : > { %v1334_v37 = vadd.f32 %v1306_v55, %v951_v24 }
 0x176   : > { %v1374_v16 = vrot.slane %v1334_v37, 1 }
 0x178   : > { %v1375_v40 = vsel %vm1358_vm2, %v1372_v41, %v1374_v16  ;;  %v1085_v51 = vpop.f32.mrf.mxu2  ;;  %v1236_v34 = vpop.f32.mrf.mxu3 }
 0x179   : > { %v1415_v15 = vadd.f32 %v1375_v40, %v1263_v63  ;;  %v952_v39 = vpop.f32.mrf.mxu1  ;;  %v1308_v18 = vpop.f32.mrf.mxu0  ;;  %v1113_v23 = vadd.f32 %v1085_v51, %v2339_v59 }
 0x17a   : > { %v953_v30 = vadd.f32 %v952_v39, %v2336_v58 }
 0x17b   : > { %1431 = vst [vmem:[%s2404_s20 + $0x38] sm:$0xff] %v1415_v15  ;;  %v1264_v62 = vadd.f32 %v1236_v34, %v1113_v23 }
 0x17c   : > { %v1335_v46 = vadd.f32 %v1308_v18, %v953_v30 }
 0x17e   : > { %v1376_v32 = vrot.slane %v1335_v46, 1 }
 0x180   : > { %v1377_v6 = vsel %vm1358_vm2, %v1374_v16, %v1376_v32  ;;  %v1087_v42 = vpop.f32.mrf.mxu2  ;;  %v1238_v53 = vpop.f32.mrf.mxu3 }
 0x181   : > { %v1416_v2 = vadd.f32 %v1377_v6, %v1264_v62  ;;  %v955_v45 = vpop.f32.mrf.mxu1  ;;  %v1311_v50 = vpop.f32.mrf.mxu0  ;;  %v1114_v49 = vadd.f32 %v1087_v42, %v2346_v17 }
 0x182   : > { %v956_v13 = vadd.f32 %v955_v45, %v2342_v7 }
 0x183   : > { %1432 = vst [vmem:[%s2404_s20 + $0x40] sm:$0xff] %v1416_v2  ;;  %v1265_v56 = vadd.f32 %v1238_v53, %v1114_v49 }
 0x184   : > { %v1336_v58 = vadd.f32 %v1311_v50, %v956_v13 }
 0x186   : > { %v1378_v22 = vrot.slane %v1336_v58, 1 }
 0x188   : > { %v1379_v59 = vsel %vm1358_vm2, %v1376_v32, %v1378_v22  ;;  %v1090_v57 = vpop.f32.mrf.mxu2  ;;  %v1241_v14 = vpop.f32.mrf.mxu3 }
 0x189   : > { %v1417_v61 = vadd.f32 %v1379_v59, %v1265_v56  ;;  %v957_v0 = vpop.f32.mrf.mxu1  ;;  %v1313_v19 = vpop.f32.mrf.mxu0  ;;  %v1115_v12 = vadd.f32 %v1090_v57, %v2356_v27 }
 0x18a   : > { %v958_v1 = vadd.f32 %v957_v0, %v2353_v26 }
 0x18b   : > { %1433 = vst [vmem:[%s2404_s20 + $0x48] sm:$0xff] %v1417_v61  ;;  %v1266_v8 = vadd.f32 %v1241_v14, %v1115_v12 }
 0x18c   : > { %v1337_v7 = vadd.f32 %v1313_v19, %v958_v1 }
 0x18e   : > { %v1380_v5 = vrot.slane %v1337_v7, 1 }
 0x190   : > { %v1381_v17 = vsel %vm1358_vm2, %v1378_v22, %v1380_v5  ;;  %v1092_v38 = vpop.f32.mrf.mxu2  ;;  %v1243_v9 = vpop.f32.mrf.mxu3 }
 0x191   : > { %v1418_v25 = vadd.f32 %v1381_v17, %v1266_v8  ;;  %v960_v29 = vpop.f32.mrf.mxu1  ;;  %v1316_v41 = vpop.f32.mrf.mxu0  ;;  %v1116_v10 = vadd.f32 %v1092_v38, %v2363_v36 }
 0x192   : > { %v961_v60 = vadd.f32 %v960_v29, %v2359_v33 }
 0x193   : > { %1434 = vst [vmem:[%s2404_s20 + $0x50] sm:$0xff] %v1418_v25  ;;  %v1267_v21 = vadd.f32 %v1243_v9, %v1116_v10 }
 0x194   : > { %v1338_v26 = vadd.f32 %v1316_v41, %v961_v60 }
 0x196   : > { %v1382_v11 = vrot.slane %v1338_v26, 1 }
 0x198   : > { %v1383_v27 = vsel %vm1358_vm2, %v1380_v5, %v1382_v11  ;;  %v1095_v3 = vpop.f32.mrf.mxu2  ;;  %v1246_v28 = vpop.f32.mrf.mxu3 }
 0x199   : > { %v1419_v55 = vadd.f32 %v1383_v27, %v1267_v21  ;;  %v962_v24 = vpop.f32.mrf.mxu1  ;;  %v1318_v48 = vpop.f32.mrf.mxu0  ;;  %v1117_v16 = vadd.f32 %v1095_v3, %v2373_v44 }
 0x19a   : > { %v963_v37 = vadd.f32 %v962_v24, %v2370_v43 }
 0x19b   : > { %1435 = vst [vmem:[%s2404_s20 + $0x58] sm:$0xff] %v1419_v55  ;;  %v1268_v40 = vadd.f32 %v1246_v28, %v1117_v16 }
 0x19c   : > { %v1339_v33 = vadd.f32 %v1318_v48, %v963_v37 }
 0x19e   : > { %v1384_v63 = vrot.slane %v1339_v33, 1 }
 0x1a0   : > { %v1385_v36 = vsel %vm1358_vm2, %v1382_v11, %v1384_v63  ;;  %v1097_v51 = vpop.f32.mrf.mxu2  ;;  %v1248_v34 = vpop.f32.mrf.mxu3 }
 0x1a1   : > { %v1420_v15 = vadd.f32 %v1385_v36, %v1268_v40  ;;  %v965_v39 = vpop.f32.mrf.mxu1  ;;  %v1321_v18 = vpop.f32.mrf.mxu0  ;;  %v1118_v23 = vadd.f32 %v1097_v51, %v2380_v52 }
 0x1a2   : > { %v966_v30 = vadd.f32 %v965_v39, %v2376_v54 }
 0x1a3   : > { %1436 = vst [vmem:[%s2404_s20 + $0x60] sm:$0xff] %v1420_v15  ;;  %v1269_v32 = vadd.f32 %v1248_v34, %v1118_v23 }
 0x1a4   : > { %v1340_v43 = vadd.f32 %v1321_v18, %v966_v30 }
 0x1a6   : > { %v1386_v46 = vrot.slane %v1340_v43, 1 }
 0x1a8   : > { %v1387_v44 = vsel %vm1358_vm2, %v1384_v63, %v1386_v46  ;;  %v1100_v62 = vpop.f32.mrf.mxu2  ;;  %v1251_v6 = vpop.f32.mrf.mxu3 }
 0x1a9   : > { %v1421_v42 = vadd.f32 %v1387_v44, %v1269_v32  ;;  %v967_v53 = vpop.f32.mrf.mxu1  ;;  %v1119_v45 = vadd.f32 %v1100_v62, %v2390_v4  ;;  %v1323_v54 = vpop.f32.mrf.mxu0 }
 0x1aa   : > { %v968_v2 = vadd.f32 %v967_v53, %v2387_v47 }
 0x1ab   : > { %1437 = vst [vmem:[%s2404_s20 + $0x68] sm:$0xff] %v1421_v42  ;;  %v1270_v52 = vadd.f32 %v1251_v6, %v1119_v45 }
 0x1ac   : > { %v1341_v50 = vadd.f32 %v1323_v54, %v968_v2 }
 0x1ae   : > { %v1388_v13 = vrot.slane %v1341_v50, 1 }
 0x1b0   : > { %v1389_v49 = vsel %vm1358_vm2, %v1386_v46, %v1388_v13  ;;  %v1102_v58 = vpop.f32.mrf.mxu2  ;;  %v1253_v59 = vpop.f32.mrf.mxu3  ;;  %v1407_v47 = vsel %vm1358_vm2, %v1388_v13, %v1359_v35 }
 0x1b1   : > { %v1422_v22 = vadd.f32 %v1389_v49, %v1270_v52  ;;  %v1120_v56 = vadd.f32 %v1102_v58, %v2392_v20 }
 0x1b3   : > { %1438 = vst [vmem:[%s2404_s20 + $0x70] sm:$0xff] %v1422_v22  ;;  %v1271_v57 = vadd.f32 %v1253_v59, %v1120_v56 }
 0x1b5   : > { %v1423_v14 = vadd.f32 %v1407_v47, %v1271_v57 }
 0x1b7   : > { %1439 = vst [vmem:[%s2404_s20 + $0x78] sm:$0xff] %v1423_v14 }
 0x1b8 PF: > { %s13_s14 = sadd.s32 1, %s2037_s14   ;;  %s2484_s12 = smov %s2033_s13 }
 0x1b9   : > { %p10_p5 = scmp.ge.s32.totalorder %s13_s14, 4   ;;  %s2485_s13 = smov %s2487_s15 }
 0x1bb   :  { %12 = sbr.rel (!%p10_p5) target bundleno = 2 (0x2), region = 81 }

</bundles_post_ra>
